<compile_context>
chip_gen: v7x
topology: tpu7x:2x2x1
jax: 0.10.0
libtpu: 0.0.40
codegen_flags: <defaults>
</compile_context>

<pallas_src>
import numpy as np
import jax
import jax.numpy as jnp
from jax import lax
from jax.experimental import pallas as pl
from jax.experimental.pallas import tpu as pltpu


def _round_up(v: int, m: int) -> int:
    return (v + m - 1) // m * m


def _vmem_capacity_bytes() -> int:
    try:
        return int(pltpu.get_tpu_info().vmem_capacity_bytes)
    except Exception:
        # v7x per-TC capacity; safe lower bound on every generation.
        return 64 * 1024 * 1024


def _lora_linear_kernel(x_ref, w_ref, bias_ref, a_ref, bs_ref, o_ref, xa_ref):
    """Grid = (M tiles, N tiles); j (out_features) is the inner, 'arbitrary' axis.

    x_ref   : [TM, IN]      compute dtype
    w_ref   : [TN, IN]      base-weight tile in native [out, in] layout, compute dtype
    bias_ref: [1, TN]       f32
    a_ref   : [IN, R_pad]   (T @ A)^T, compute dtype (grid-invariant)
    bs_ref  : [R_pad, TN]   scaling * B^T tile, f32
    o_ref   : [TM, TN]
    xa_ref  : [TM, R_pad]   f32 VMEM scratch; persists across the j axis
    """
    j = pl.program_id(1)
    x = x_ref[...]

    # LoRA down-projection depends only on the row tile: compute once per row tile.
    @pl.when(j == 0)
    def _():
        xa_ref[...] = jnp.dot(x, a_ref[...], preferred_element_type=jnp.float32)

    # Base matmul: x [TM, IN] contracted against the W tile [TN, IN] on the IN axis
    # (W keeps PyTorch's [out, in] layout; per-tile RHS transpose rides the XLU).
    base = lax.dot_general(
        x, w_ref[...],
        dimension_numbers=(((1,), (1,)), ((), ())),
        preferred_element_type=jnp.float32)                              # [TM, TN]
    delta = jnp.dot(xa_ref[...], bs_ref[...],
                    preferred_element_type=jnp.float32)                  # [TM, TN]
    o_ref[...] = (base + bias_ref[...] + delta).astype(o_ref.dtype)


def lora_linear_forward(x, w_base, b_base, lora_A, lora_T, lora_B, scaling, *,
                        tm=512, tn=512, compute_dtype=jnp.bfloat16, out_dtype=None):
    """x: [..., in_features]; weights in PyTorch convention:
         w_base: [out, in], lora_A: [r, in], lora_T: [r, r], lora_B: [out, r]."""
    orig_shape = x.shape
    in_features = orig_shape[-1]
    out_features = w_base.shape[0]
    r = lora_A.shape[0]
    if out_dtype is None:
        out_dtype = x.dtype
    compute_dtype = np.dtype(compute_dtype)
    out_dtype = np.dtype(out_dtype)

    x2d = x.reshape(-1, in_features)
    M = x2d.shape[0]

    itemsize = compute_dtype.itemsize
    out_itemsize = out_dtype.itemsize
    sub = {1: 32, 2: 16, 4: 8}.get(itemsize, 8)      # packed-sublane granularity
    r_pad = _round_up(r, 128)

    # --- Host-side folds (cheap, O(r*(in+out))): T into A, scaling into B^T. ---
    a_eff = (lora_T.astype(jnp.float32) @ lora_A.astype(jnp.float32)).T   # [in, r]
    a_eff = a_eff.astype(compute_dtype)
    b_s = lora_B.T.astype(jnp.float32) * jnp.float32(scaling)             # [r, out] f32
    bias = b_base.reshape(1, out_features).astype(jnp.float32)

    # --- Tile sizes: clamp for small problems, shrink only if VMEM would overflow. ---
    tm_eff = min(tm, _round_up(M, sub))
    tn_eff = min(tn, _round_up(out_features, 128))

    def _working_set(tm_b, tn_b):
        return (2 * tm_b * in_features * itemsize        # x       (double-buffered)
                + 2 * tn_b * in_features * itemsize      # W tile
                + 2 * in_features * r_pad * itemsize     # (T@A)^T
                + 2 * r_pad * tn_b * 4                   # s*B^T (f32)
                + 2 * tn_b * 4                           # bias
                + 2 * tm_b * tn_b * out_itemsize         # output
                + tm_b * r_pad * 4)                      # xa scratch (f32)

    vmem_capacity = _vmem_capacity_bytes()
    vmem_work_cap = max(vmem_capacity - 12 * 1024 * 1024, 32 * 1024 * 1024)
    # TODO(synk): replace tile shrinking with a K (in_features) grid axis for huge IN.
    while (_working_set(tm_eff, tn_eff) > vmem_work_cap
           and tn_eff >= 512 and tn_eff % 256 == 0):
        tn_eff //= 2
    while (_working_set(tm_eff, tn_eff) > vmem_work_cap
           and tm_eff > 16 * sub and tm_eff % (2 * sub) == 0):
        tm_eff //= 2

    m_pad = _round_up(M, tm_eff)
    n_pad = _round_up(out_features, tn_eff)

    # --- Pad / cast only when needed (aligned shapes touch no extra HBM). ---
    x_c = x2d if x2d.dtype == compute_dtype else x2d.astype(compute_dtype)
    if m_pad != M:
        x_c = jnp.zeros((m_pad, in_features), compute_dtype).at[:M].set(x_c)

    w_c = w_base if w_base.dtype == compute_dtype else w_base.astype(compute_dtype)
    if n_pad != out_features:
        w_c = jnp.zeros((n_pad, in_features), compute_dtype).at[:out_features].set(w_c)

    bias_c = (bias if n_pad == out_features
              else jnp.zeros((1, n_pad), jnp.float32).at[:, :out_features].set(bias))
    b_sp = (b_s if (r_pad == r and n_pad == out_features)
            else jnp.zeros((r_pad, n_pad), jnp.float32).at[:r, :out_features].set(b_s))
    a_p = (a_eff if r_pad == r
           else jnp.zeros((in_features, r_pad), compute_dtype).at[:, :r].set(a_eff))

    grid = (m_pad // tm_eff, n_pad // tn_eff)

    flops = (2 * m_pad * in_features * n_pad
             + 2 * m_pad * in_features * r_pad
             + 2 * m_pad * r_pad * n_pad)
    bytes_accessed = (m_pad * in_features * itemsize
                      + n_pad * in_features * itemsize
                      + in_features * r_pad * itemsize
                      + r_pad * n_pad * 4 + n_pad * 4
                      + m_pad * n_pad * out_itemsize)

    vmem_limit = int(min(
        max(int(_working_set(tm_eff, tn_eff) * 1.25) + (2 << 20), 32 * 1024 * 1024),
        vmem_capacity - 4 * 1024 * 1024))

    out2d = pl.pallas_call(
        _lora_linear_kernel,
        out_shape=jax.ShapeDtypeStruct((m_pad, n_pad), out_dtype),
        grid_spec=pltpu.PrefetchScalarGridSpec(
            num_scalar_prefetch=0,
            grid=grid,
            in_specs=[
                pl.BlockSpec((tm_eff, in_features), lambda i, j: (i, 0)),    # x
                pl.BlockSpec((tn_eff, in_features), lambda i, j: (j, 0)),    # W [out,in]
                pl.BlockSpec((1, tn_eff), lambda i, j: (0, j)),              # bias
                pl.BlockSpec((in_features, r_pad), lambda i, j: (0, 0)),     # (T@A)^T
                pl.BlockSpec((r_pad, tn_eff), lambda i, j: (0, j)),          # s*B^T
            ],
            out_specs=pl.BlockSpec((tm_eff, tn_eff), lambda i, j: (i, j)),
            scratch_shapes=[pltpu.VMEM((tm_eff, r_pad), jnp.float32)],
        ),
        compiler_params=pltpu.CompilerParams(
            dimension_semantics=("parallel", "arbitrary"),
            vmem_limit_bytes=vmem_limit,
        ),
        cost_estimate=pl.CostEstimate(
            flops=flops, transcendentals=0, bytes_accessed=bytes_accessed),
    )(x_c, w_c, bias_c, a_p, b_sp)

    if m_pad != M or n_pad != out_features:
        out2d = out2d[:M, :out_features]
    return out2d.reshape(*orig_shape[:-1], out_features)


if __name__ == "__main__":
    # Small shapes consistent with a LoRA-wrapped nn.Linear.
    batch, seq = 2, 8
    in_features, out_features = 32, 64
    r, lora_alpha = 8, 16
    scaling = lora_alpha / r             # use_rslora=False
    # lora_dropout=0.0 -> dropout is identity; nothing to do in the kernel.

    key = jax.random.PRNGKey(0)
    kx, kw, kb, ka, kbb = jax.random.split(key, 5)

    x = jax.random.normal(kx, (batch, seq, in_features), dtype=jnp.float32)
    w_base = jax.random.normal(kw, (out_features, in_features), jnp.float32) * 0.05
    b_base = jax.random.normal(kb, (out_features,), jnp.float32) * 0.01
    lora_A = jax.random.normal(ka, (r, in_features), jnp.float32) * 0.1
    lora_B = jax.random.normal(kbb, (out_features, r), jnp.float32) * 0.1
    lora_T = jnp.eye(r, dtype=jnp.float32)   # transform matrix initialized to identity

    # Pure-JAX reference (matches the PyTorch forward, unmerged path, p=0.0).
    x2d = x.reshape(-1, in_features)
    ref = x2d @ w_base.T + b_base
    ref = ref + scaling * (((x2d @ lora_A.T) @ lora_T.T) @ lora_B.T)
    ref = ref.reshape(batch, seq, out_features)

    # f32 operand path: tight tolerance.
    out_f32 = lora_linear_forward(x, w_base, b_base, lora_A, lora_T, lora_B, scaling,
                                  compute_dtype=jnp.float32)
    out_f32 = jax.block_until_ready(out_f32)
    assert out_f32.shape == (batch, seq, out_features)
    assert jnp.allclose(out_f32, ref, atol=1e-4, rtol=1e-4)

    # Default bf16 operand / f32 accumulation path: relaxed tolerance.
    out_bf16 = lora_linear_forward(x, w_base, b_base, lora_A, lora_T, lora_B, scaling)
    out_bf16 = jax.block_until_ready(out_bf16)
    assert out_bf16.shape == (batch, seq, out_features)
    assert jnp.allclose(out_bf16.astype(jnp.float32), ref, atol=5e-2, rtol=5e-2)

    print("KERNEL_OK")
</pallas_src>

<mosaic_0001>
module attributes {stable_mosaic.version = 11 : i64} {
  func.func @_lora_linear_kernel(%arg0: i32, %arg1: i32, %arg2: memref<16x32xf32, #tpu.memory_space<vmem>>, %arg3: memref<128x32xf32, #tpu.memory_space<vmem>>, %arg4: memref<1x128xf32, #tpu.memory_space<vmem>>, %arg5: memref<32x128xf32, #tpu.memory_space<vmem>>, %arg6: memref<128x128xf32, #tpu.memory_space<vmem>>, %arg7: memref<16x128xf32, #tpu.memory_space<vmem>>, %arg8: memref<16x128xf32, #tpu.memory_space<vmem>>) attributes {dimension_semantics = [#tpu.dimension_semantics<parallel>, #tpu.dimension_semantics<arbitrary>], iteration_bounds = array<i64: 1, 1>, scalar_prefetch = 0 : i64, scratch_operands = 1 : i64, tpu.core_type = #tpu.core_type<tc>, window_params = [{transform_indices = @transform_0, window_bounds = array<i64: 16, 32>}, {transform_indices = @transform_1, window_bounds = array<i64: 128, 32>}, {transform_indices = @transform_2, window_bounds = array<i64: 1, 128>}, {pipeline_mode = #tpu.pipeline_mode<synchronous>, transform_indices = @transform_3, window_bounds = array<i64: 32, 128>}, {transform_indices = @transform_4, window_bounds = array<i64: 128, 128>}, {transform_indices = @transform_5, window_bounds = array<i64: 16, 128>}]} {
    %c0 = arith.constant 0 : index
    %c0_0 = arith.constant 0 : index
    %0 = vector.load %arg2[%c0, %c0_0] : memref<16x32xf32, #tpu.memory_space<vmem>>, vector<16x32xf32>
    %c0_i32 = arith.constant 0 : i32
    %1 = arith.cmpi eq, %arg1, %c0_i32 : i32
    %2 = arith.extui %1 : i1 to i32
    %c0_i32_1 = arith.constant 0 : i32
    %3 = arith.cmpi ne, %2, %c0_i32_1 : i32
    scf.if %3 {
      %c0_13 = arith.constant 0 : index
      %c0_14 = arith.constant 0 : index
      %14 = vector.load %arg5[%c0_13, %c0_14] : memref<32x128xf32, #tpu.memory_space<vmem>>, vector<32x128xf32>
      %cst_15 = arith.constant dense<0.000000e+00> : vector<16x128xf32>
      %15 = tpu.matmul %0, %14, %cst_15 {dimension_numbers = #tpu.dot_dimension_numbers<[1], [0], [0], [1], [0, 0, 1, 1], [], []>} : vector<16x32xf32>, vector<32x128xf32>, vector<16x128xf32> -> vector<16x128xf32>
      %c0_16 = arith.constant 0 : index
      %c0_17 = arith.constant 0 : index
      %16 = vector.load %arg8[%c0_16, %c0_17] : memref<16x128xf32, #tpu.memory_space<vmem>>, vector<16x128xf32>
      tpu.vector_store %arg8[%c0_16, %c0_17], %15 {strides = array<i32>} : memref<16x128xf32, #tpu.memory_space<vmem>>, vector<16x128xf32>,
    } else {
    }
    %c0_2 = arith.constant 0 : index
    %c0_3 = arith.constant 0 : index
    %4 = vector.load %arg3[%c0_2, %c0_3] : memref<128x32xf32, #tpu.memory_space<vmem>>, vector<128x32xf32>
    %cst = arith.constant dense<0.000000e+00> : vector<16x128xf32>
    %5 = tpu.matmul %0, %4, %cst {dimension_numbers = #tpu.dot_dimension_numbers<[1], [1], [0], [0], [0, 0, 1, 0], [], []>} : vector<16x32xf32>, vector<128x32xf32>, vector<16x128xf32> -> vector<16x128xf32>
    %c0_4 = arith.constant 0 : index
    %c0_5 = arith.constant 0 : index
    %6 = vector.load %arg8[%c0_4, %c0_5] : memref<16x128xf32, #tpu.memory_space<vmem>>, vector<16x128xf32>
    %c0_6 = arith.constant 0 : index
    %c0_7 = arith.constant 0 : index
    %7 = vector.load %arg6[%c0_6, %c0_7] : memref<128x128xf32, #tpu.memory_space<vmem>>, vector<128x128xf32>
    %cst_8 = arith.constant dense<0.000000e+00> : vector<16x128xf32>
    %8 = tpu.matmul %6, %7, %cst_8 {dimension_numbers = #tpu.dot_dimension_numbers<[1], [0], [0], [1], [0, 0, 1, 1], [], []>} : vector<16x128xf32>, vector<128x128xf32>, vector<16x128xf32> -> vector<16x128xf32>
    %c0_9 = arith.constant 0 : index
    %c0_10 = arith.constant 0 : index
    %9 = vector.load %arg4[%c0_9, %c0_10] : memref<1x128xf32, #tpu.memory_space<vmem>>, vector<1x128xf32>
    %10 = vector.broadcast %9 : vector<1x128xf32> to vector<16x128xf32>
    %11 = arith.addf %5, %10 : vector<16x128xf32>
    %12 = arith.addf %11, %8 : vector<16x128xf32>
    %c0_11 = arith.constant 0 : index
    %c0_12 = arith.constant 0 : index
    %13 = vector.load %arg7[%c0_11, %c0_12] : memref<16x128xf32, #tpu.memory_space<vmem>>, vector<16x128xf32>
    tpu.vector_store %arg7[%c0_11, %c0_12], %12 {strides = array<i32>} : memref<16x128xf32, #tpu.memory_space<vmem>>, vector<16x128xf32>,
    return
  }
  func.func @transform_0(%arg0: i32, %arg1: i32) -> (i32, i32) {
    %c0_i32 = arith.constant 0 : i32
    %c0_i32_0 = arith.constant 0 : i32
    return %arg0, %c0_i32 : i32, i32
  }
  func.func @transform_1(%arg0: i32, %arg1: i32) -> (i32, i32) {
    %c0_i32 = arith.constant 0 : i32
    %c0_i32_0 = arith.constant 0 : i32
    return %arg1, %c0_i32 : i32, i32
  }
  func.func @transform_2(%arg0: i32, %arg1: i32) -> (i32, i32) {
    %c0_i32 = arith.constant 0 : i32
    %c0_i32_0 = arith.constant 0 : i32
    return %c0_i32, %arg1 : i32, i32
  }
  func.func @transform_3(%arg0: i32, %arg1: i32) -> (i32, i32) {
    %c0_i32 = arith.constant 0 : i32
    %c0_i32_0 = arith.constant 0 : i32
    %c0_i32_1 = arith.constant 0 : i32
    return %c0_i32, %c0_i32_0 : i32, i32
  }
  func.func @transform_4(%arg0: i32, %arg1: i32) -> (i32, i32) {
    %c0_i32 = arith.constant 0 : i32
    %c0_i32_0 = arith.constant 0 : i32
    return %c0_i32, %arg1 : i32, i32
  }
  func.func @transform_5(%arg0: i32, %arg1: i32) -> (i32, i32) {
    %c0_i32 = arith.constant 0 : i32
    return %arg0, %arg1 : i32, i32
  }
}

</mosaic_0001>

<bundles_post_ra>
// kernel: tpu_custom_call.1
= control target key start
LH: loop header
LB: loop body
LE: loop exit
PB: predicated region body
PF: predicated region fallthrough
CT: control target
= control target key end

     0   :  { %10 = vsyncpa [#allocation4], 0  ;;  %s905_s0 = inlined_call_operand.hbm [shape: f32[16,32], index: 0, kind: input, shape index: {}]   ;;  %s906_s1 = inlined_call_operand.vmem [shape: f32[128,32], index: 1, kind: input, shape index: {}]   ;;  %s907_s2 = inlined_call_operand.vmem [shape: f32[1,128], index: 2, kind: input, shape index: {}]   ;;  %s908_s3 = inlined_call_operand.vmem [shape: f32[32,128], index: 3, kind: input, shape index: {}]   ;;  %s909_s4 = inlined_call_operand.vmem [shape: f32[128,128], index: 4, kind: input, shape index: {}]   ;;  %s910_s5 = inlined_call_operand.hbm [shape: f32[16,128], index: 5, kind: output, shape index: {}]  }
   0x1   :  { %11 = vsyncpa [#allocation5], 0  ;;  %s684_s18 = smov [#allocation3]   ;;  %s636_s22 = scalar_lea.hbm %s905_s0, 256 }
   0x2   :  { %s17_s19 = sshll.u32 %s684_s18, 4  ;;  %p637_p0 = scmp.ne.s32.totalorder %s905_s0, %s636_s22  ;;  %s18_s19 = int_to_ptr.vmem [resolvable:$true] %s17_s19 }
   0x3   :  { %p640_p1 = scmp.lt.u32.totalorder %s636_s22, %s905_s0 }
   0x5   :  { %p642_p2 = pnand %p640_p1, %p637_p0 }
   0x7   :  { %645 = shalt.err (!%p642_p2)
}
   0x8   :  { %s646_s27 = scalar_lea.vmem %s18_s19, 256  ;;  %p651_p4 = scmp.lt.s32.totalorder %s18_s19, %s18_s19 }
   0x9   :  { %p647_p3 = scmp.ne.s32.totalorder %s18_s19, %s646_s27  ;;  %p652_p5 = scmp.lt.s32.totalorder %s646_s27, %s646_s27 }
   0xb   :  { %p653_p6 = por %p652_p5, %p651_p4 }
   0xd   :  { %p654_p7 = pnand %p653_p6, %p647_p3 }
   0xf   :  { %657 = shalt.err (!%p654_p7)
}
  0x10   :  { %s685_s28 = smov 128   ;;  %s686_s29 = smov 8  }
  0x11   :  { %23 = dma.hbm_to_vmem [thread:$0]  %s905_s0, 256, %s18_s19, [#allocation4], %s685_s28, %s685_s28, %s686_s29  }
  0x12   :  { %680 = dma.done.wait [#allocation4], 256  }
  0x13   :  { %681 = vsyncadd [#allocation4], 4294967040  ;;  %vm45_vm0 = vcmask 261120   ;;  %v41_v0 = vld [vmem:[%s908_s3] sm:$0xff]  ;;  %v42_v1 = vld [vmem:[%s908_s3 + $0x8] sm:$0xff]  ;;  %s687_s27 = smov [#allocation6]  }
  0x14   :  { %v43_v2 = vld [vmem:[%s908_s3 + $0x10] sm:$0xff]  ;;  %v540_v3 = vpack.c.bf16 %v42_v1, %v41_v0  ;;  %v44_v4 = vld [vmem:[%s908_s3 + $0x18] sm:$0xff]  ;;  %v35_v5 = vld [vmem:[#allocation3] sm:$0xff]  ;;  %s384_s30 = sshll.u32 %s687_s27, 4  ;;  %s385_s30 = int_to_ptr.vmem [resolvable:$true] %s384_s30 }
  0x15   :  { %vm747_vm1 = vmpackc.low %vm45_vm0, %vm45_vm0  ;;  %v544_v7 = vpack.c.bf16 %v44_v4, %v43_v2  ;;  %467 = vmatprep.mubr.msk.f32.mxu0 %vm45_vm0, %v35_v5  ;;  %v129_v8 = vld [vmem:[%s906_s1] sm:$0xff]  ;;  %v130_v9 = vld [vmem:[%s906_s1 + $0x8] sm:$0xff]  ;;  %537 = vmatprep.mubr.msk.f32.mxu1 %vm45_vm0, %v35_v5  ;;  %s658_s6 = scalar_lea.vmem %s385_s30, 256  ;;  %p663_p9 = scmp.lt.s32.totalorder %s385_s30, %s385_s30 }
  0x16   :  { %v131_v10 = vld [vmem:[%s906_s1 + $0x10] sm:$0xff]  ;;  %541 = vmatprep.subr.bf16.mxu0 %v540_v3  ;;  %v580_v11 = vpack.c.bf16 %v130_v9, %v129_v8  ;;  %v132_v12 = vld [vmem:[%s906_s1 + $0x18] sm:$0xff]  ;;  %v147_v14 = vld [vmem:[%s909_s4] sm:$0xff]  ;;  %p659_p8 = scmp.ne.s32.totalorder %s385_s30, %s658_s6  ;;  %p664_p10 = scmp.lt.s32.totalorder %s658_s6, %s658_s6 }
  0x17   :  { %543 = vmatpush3.bf16.msra.mxu0 %v540_v3  ;;  %v586_v13 = vpack.c.bf16 %v132_v12, %v131_v10  ;;  %v148_v15 = vld [vmem:[%s909_s4 + $0x8] sm:$0xff]  ;;  %v149_v17 = vld [vmem:[%s909_s4 + $0x10] sm:$0xff]  ;;  %v150_v18 = vld [vmem:[%s909_s4 + $0x18] sm:$0xff] }
  0x18   :  { %545 = vmatprep.subr.bf16.mxu0 %v544_v7  ;;  %582 = vmatprep.subr.msk.bf16.mxu1 %vm747_vm1, %v580_v11  ;;  %v548_v16 = vpack.c.bf16 %v148_v15, %v147_v14  ;;  %v783_v19 = vld [vmem:[#allocation3 + $0x8] sm:$0xff]  ;;  %v133_v20 = vld [vmem:[%s906_s1 + $0x20] sm:$0xff]  ;;  %v552_v22 = vpack.c.bf16 %v150_v18, %v149_v17  ;;  %v153_v27 = vld [vmem:[%s909_s4 + $0x30] sm:$0xff]  ;;  %p665_p11 = por %p664_p10, %p663_p9 }
  0x19   :  { %585 = vmatpush3.bf16.xpose.msk.msra.mxu1 %vm747_vm1, %v580_v11  ;;  %v134_v21 = vld [vmem:[%s906_s1 + $0x28] sm:$0xff]  ;;  %v151_v23 = vld [vmem:[%s909_s4 + $0x20] sm:$0xff]  ;;  %v154_v28 = vld [vmem:[%s909_s4 + $0x38] sm:$0xff] }
  0x1a   :  { %588 = vmatprep.subr.msk.bf16.mxu1 %vm747_vm1, %v586_v13  ;;  %v152_v24 = vld [vmem:[%s909_s4 + $0x28] sm:$0xff]  ;;  %v592_v25 = vpack.c.bf16 %v134_v21, %v133_v20  ;;  %v135_v29 = vld [vmem:[%s906_s1 + $0x30] sm:$0xff]  ;;  %v136_v30 = vld [vmem:[%s906_s1 + $0x38] sm:$0xff]  ;;  %v560_v31 = vpack.c.bf16 %v154_v28, %v153_v27  ;;  %p666_p12 = pnand %p665_p11, %p659_p8 }
  0x1b   :  { %547 = vmatpush3.bf16.msra.mxu0 %v544_v7  ;;  %v556_v26 = vpack.c.bf16 %v152_v24, %v151_v23  ;;  %v155_v32 = vld [vmem:[%s909_s4 + $0x40] sm:$0xff]  ;;  %v156_v33 = vld [vmem:[%s909_s4 + $0x48] sm:$0xff]  ;;  %v598_v34 = vpack.c.bf16 %v136_v30, %v135_v29  ;;  %v157_v36 = vld [vmem:[%s909_s4 + $0x50] sm:$0xff] }
  0x1c   :  { %549 = vmatprep.subr.bf16.mxu0 %v548_v16  ;;  %v564_v35 = vpack.c.bf16 %v156_v33, %v155_v32  ;;  %v158_v37 = vld [vmem:[%s909_s4 + $0x58] sm:$0xff]  ;;  %v137_v38 = vld [vmem:[%s906_s1 + $0x40] sm:$0xff]  ;;  %v138_v39 = vld [vmem:[%s906_s1 + $0x48] sm:$0xff] }
  0x1d   :  { %v568_v40 = vpack.c.bf16 %v158_v37, %v157_v36  ;;  %v159_v41 = vld [vmem:[%s909_s4 + $0x60] sm:$0xff]  ;;  %v160_v42 = vld [vmem:[%s909_s4 + $0x68] sm:$0xff]  ;;  %v604_v43 = vpack.c.bf16 %v138_v39, %v137_v38  ;;  %v161_v45 = vld [vmem:[%s909_s4 + $0x70] sm:$0xff] }
  0x1e   :  { %468 = vmatmul.mubr.msk.f32.vlgmr.msra.gmra.mrb[0].mxu0 %vm45_vm0, %v783_v19  ;;  %v572_v44 = vpack.c.bf16 %v160_v42, %v159_v41  ;;  %v162_v46 = vld [vmem:[%s909_s4 + $0x78] sm:$0xff]  ;;  %v139_v47 = vld [vmem:[%s906_s1 + $0x50] sm:$0xff]  ;;  %v141_v51 = vld [vmem:[%s906_s1 + $0x60] sm:$0xff] }
  0x1f   :  { %551 = vmatpush3.bf16.msra.mxu0 %v548_v16  ;;  %v140_v48 = vld [vmem:[%s906_s1 + $0x58] sm:$0xff]  ;;  %v576_v49 = vpack.c.bf16 %v162_v46, %v161_v45  ;;  %v142_v52 = vld [vmem:[%s906_s1 + $0x68] sm:$0xff]  ;;  %v143_v54 = vld [vmem:[%s906_s1 + $0x70] sm:$0xff] }
  0x20   :  { %553 = vmatprep.subr.bf16.mxu0 %v552_v22  ;;  %v610_v50 = vpack.c.bf16 %v140_v48, %v139_v47  ;;  %v616_v53 = vpack.c.bf16 %v142_v52, %v141_v51  ;;  %v144_v55 = vld [vmem:[%s906_s1 + $0x78] sm:$0xff]  ;;  %v398_v62 = vld [vmem:[%s907_s2] ss:$0 sm:$0xff] }
  0x21   :  { %591 = vmatpush3.bf16.xpose.msk.msra.mxu1 %vm747_vm1, %v586_v13  ;;  %v622_v56 = vpack.c.bf16 %v144_v55, %v143_v54 }
  0x22   :  { %594 = vmatprep.subr.msk.bf16.mxu1 %vm747_vm1, %v592_v25 }
  0x23   :  { %555 = vmatpush3.bf16.msra.mxu0 %v552_v22 }
  0x24   :  { %557 = vmatprep.subr.bf16.mxu0 %v556_v26 }
  0x27   :  { %559 = vmatpush3.bf16.msra.mxu0 %v556_v26 }
  0x28   :  { %561 = vmatprep.subr.bf16.mxu0 %v560_v31 }
  0x29   :  { %597 = vmatpush3.bf16.xpose.msk.msra.mxu1 %vm747_vm1, %v592_v25 }
  0x2a   :  { %600 = vmatprep.subr.msk.bf16.mxu1 %vm747_vm1, %v598_v34 }
  0x2b   :  { %563 = vmatpush3.bf16.msra.mxu0 %v560_v31 }
  0x2c   :  { %565 = vmatprep.subr.bf16.mxu0 %v564_v35 }
  0x2f   :  { %567 = vmatpush3.bf16.msra.mxu0 %v564_v35 }
  0x30   :  { %569 = vmatprep.subr.bf16.mxu0 %v568_v40 }
  0x31   :  { %603 = vmatpush3.bf16.xpose.msk.msra.mxu1 %vm747_vm1, %v598_v34 }
  0x32   :  { %606 = vmatprep.subr.msk.bf16.mxu1 %vm747_vm1, %v604_v43 }
  0x33   :  { %571 = vmatpush3.bf16.msra.mxu0 %v568_v40 }
  0x34   :  { %573 = vmatprep.subr.bf16.mxu0 %v572_v44 }
  0x37   :  { %575 = vmatpush3.bf16.msra.mxu0 %v572_v44 }
  0x38   :  { %577 = vmatprep.subr.bf16.mxu0 %v576_v49 }
  0x39   :  { %609 = vmatpush3.bf16.xpose.msk.msra.mxu1 %vm747_vm1, %v604_v43 }
  0x3a   :  { %612 = vmatprep.subr.msk.bf16.mxu1 %vm747_vm1, %v610_v50 }
  0x3b   :  { %579 = vmatpush3.bf16.msra.mxu0 %v576_v49 }
  0x41   :  { %615 = vmatpush3.bf16.xpose.msk.msra.mxu1 %vm747_vm1, %v610_v50 }
  0x42   :  { %618 = vmatprep.subr.msk.bf16.mxu1 %vm747_vm1, %v616_v53 }
  0x49   :  { %621 = vmatpush3.bf16.xpose.msk.msra.mxu1 %vm747_vm1, %v616_v53 }
  0x4a   :  { %624 = vmatprep.subr.msk.bf16.mxu1 %vm747_vm1, %v622_v56 }
  0x51   :  { %627 = vmatpush3.bf16.xpose.msk.msra.mxu1 %vm747_vm1, %v622_v56 }
  0x58   :  { %538 = vmatmul.mubr.msk.f32.vlgmr.msra.gmra.mrb[0].mxu1 %vm45_vm0, %v783_v19 }
  0xf1   :  { %v469_v57 = vpop.f32.mrb[0].mxu0 }
  0xf2   :  { %v118_v58 = vpop.f32.mrb[1].mxu0 }
  0xf3   :  { %502 = vmatprep.mubr.f32.mxu0 %v118_v58 }
  0xf4   :  { %503 = vmatmul.mubr.f32.vlgmr.msra.gmra.mrb[2].mxu0 %v469_v57 }
 0x12b   :  { %v539_v59 = vpop.f32.mrb[0].mxu1 }
 0x12c   :  { %v366_v60 = vpop.f32.mrb[1].mxu1 }
 0x1c7   :  { %v504_v61 = vpop.f32.mrb[2].mxu0 }
 0x1c8   :  { %v628_v63 = vadd.f32 %v539_v59, %v504_v61  ;;  %v229_v0 = vpop.f32.mrb[3].mxu0 }
 0x1c9   :  { %v630_v1 = vadd.f32 %v366_v60, %v229_v0 }
 0x1ca   :  { %v629_v2 = vadd.f32 %v628_v63, %v398_v62 }
 0x1cb   :  { %v631_v3 = vadd.f32 %v630_v1, %v398_v62 }
 0x1cc   :  { %378 = vst [vmem:[#allocation6 + $0x8] sm:$0xff] %v629_v2 }
 0x1cd   :  { %377 = vst [vmem:[#allocation6] sm:$0xff] %v631_v3 }
 0x1ce   :  { %669 = shalt.err (!%p666_p12)
}
 0x1cf   :  { %s670_s2 = scalar_lea.hbm %s910_s5, 256 }
 0x1d0   :  { %p671_p13 = scmp.ne.s32.totalorder %s910_s5, %s670_s2  ;;  %p674_p0 = scmp.lt.u32.totalorder %s670_s2, %s910_s5 }
 0x1d2   :  { %p676_p1 = pnand %p674_p0, %p671_p13 }
 0x1d4   :  { %679 = shalt.err (!%p676_p1)
}
 0x1d5   :  { %390 = dma.vmem_to_hbm [thread:$0]  %s385_s30, 256, %s910_s5, [#allocation5], %s685_s28, %s685_s28, %s686_s29  }
 0x1d6   :  { %682 = dma.done.wait [#allocation5], 256  }
 0x1d7   :  { %683 = vsyncadd [#allocation5], 4294967040 }
 0x1d8   :  { %394 = vsyncpa [#allocation4], 1 }
 0x1d9   :  { %395 = vsyncpa [#allocation5], 1 }

</bundles_post_ra>
